<compile_context>
chip_gen: v7x
topology: tpu7x:2x2x1
jax: 0.10.0
libtpu: 0.0.40
codegen_flags: <defaults>
</compile_context>

<pallas_src>
import jax
import jax.numpy as jnp
from jax.experimental import pallas as pl
from jax.experimental.pallas import tpu as pltpu


def _round_up(x, m):
    return ((x + m - 1) // m) * m


# ------------------------------ fused kernel ---------------------------------

def _core_kernel(patch_ref, pool_ref, wpt_ref, bpt_ref, wg_ref, bg_ref,
                 wpj_ref, bpj_ref, f_ref, fg_ref, pg_ref, acc_ref):
    """One grid step handles TILE_M rows of the flattened (B*N) token axis.

    patch_ref: (TILE_M, Din)       flattened image patches for these rows
    pool_ref : (B, TILE_M)         per-image mean-pool weights for these rows
    wpt/bpt  : (Din, Cp), (1, Cp)  patch-embedding ("backbone") weights
    wg /bg   : (Cp, Cp),  (1, Cp)  global_fn linear (applied to pooled tokens)
    wpj/bpj  : (Cp, SCp), (1, SCp) global_proj linear
    f_ref    : (TILE_M, Cp)        backbone features for these rows
    fg_ref   : (B, Cp)             global features    (written on last step)
    pg_ref   : (B, SCp)            global projections (written on last step)
    acc_ref  : (B, Cp) f32 VMEM    running per-image pooled-feature accumulator
    """
    m = pl.program_id(0)

    @pl.when(m == 0)
    def _init():
        acc_ref[...] = jnp.zeros_like(acc_ref)

    # Patch embedding: one lane-dense MXU matmul over TILE_M rows.
    f = jnp.dot(patch_ref[...], wpt_ref[...],
                preferred_element_type=jnp.float32) + bpt_ref[...]
    f_ref[...] = f.astype(f_ref.dtype)

    # Fused global head, stage 1: accumulate per-image mean pooling as a
    # (B, TILE_M) @ (TILE_M, Cp) matmul.  pool rows hold 1/N at the token
    # positions of each image and 0 elsewhere (including padding rows).
    acc_ref[...] += jnp.dot(pool_ref[...], f, preferred_element_type=jnp.float32)

    # Fused global head, stage 2: two matmuls batched over all B images.
    @pl.when(m == pl.num_programs(0) - 1)
    def _finalize():
        fg = jnp.dot(acc_ref[...], wg_ref[...],
                     preferred_element_type=jnp.float32) + bg_ref[...]
        pg = jnp.dot(fg, wpj_ref[...],
                     preferred_element_type=jnp.float32) + bpj_ref[...]
        fg_ref[...] = fg.astype(fg_ref.dtype)
        pg_ref[...] = pg.astype(pg_ref.dtype)


def _fused_forward(patches, pool, wpt, bpt, wg, bg, wpj, bpj, *, tile_m):
    """patches: (Mp, Din) padded rows; pool: (B, Mp). All feature dims padded
    to multiples of 128.  Returns (f_slab (Mp, Cp), f_global (B, Cp),
    p_global (B, SCp))."""
    Mp, Din = patches.shape
    B = pool.shape[0]
    Cp = wpt.shape[1]
    SCp = wpj.shape[1]
    n_tiles = Mp // tile_m

    flops = (2 * Mp * Din * Cp          # patch embedding
             + 2 * B * Mp * Cp          # pooling matmul
             + 2 * B * Cp * Cp          # global_fn
             + 2 * B * Cp * SCp)        # global_proj
    bytes_accessed = 4 * (Mp * Din + B * Mp
                          + Din * Cp + Cp + Cp * Cp + Cp + Cp * SCp + SCp
                          + Mp * Cp + B * Cp + B * SCp)

    return pl.pallas_call(
        _core_kernel,
        out_shape=(
            jax.ShapeDtypeStruct((Mp, Cp), jnp.float32),
            jax.ShapeDtypeStruct((B, Cp), jnp.float32),
            jax.ShapeDtypeStruct((B, SCp), jnp.float32),
        ),
        grid_spec=pltpu.PrefetchScalarGridSpec(
            num_scalar_prefetch=0,
            grid=(n_tiles,),
            in_specs=[
                pl.BlockSpec((tile_m, Din), lambda m: (m, 0)),   # patches
                pl.BlockSpec((B, tile_m), lambda m: (0, m)),     # pool weights
                pl.BlockSpec((Din, Cp), lambda m: (0, 0)),       # w_patch
                pl.BlockSpec((1, Cp), lambda m: (0, 0)),         # b_patch
                pl.BlockSpec((Cp, Cp), lambda m: (0, 0)),        # w_g
                pl.BlockSpec((1, Cp), lambda m: (0, 0)),         # b_g
                pl.BlockSpec((Cp, SCp), lambda m: (0, 0)),       # w_p
                pl.BlockSpec((1, SCp), lambda m: (0, 0)),        # b_p
            ],
            out_specs=(
                pl.BlockSpec((tile_m, Cp), lambda m: (m, 0)),    # f slab
                pl.BlockSpec((B, Cp), lambda m: (0, 0)),         # f_global
                pl.BlockSpec((B, SCp), lambda m: (0, 0)),        # p_global
            ),
            scratch_shapes=[pltpu.VMEM((B, Cp), jnp.float32)],
        ),
        compiler_params=pltpu.CompilerParams(
            # the single grid axis carries the pooled-feature accumulator
            dimension_semantics=("arbitrary",),
        ),
        cost_estimate=pl.CostEstimate(
            flops=flops, transcendentals=0, bytes_accessed=bytes_accessed),
    )(patches, pool, wpt, bpt, wg, bg, wpj, bpj)


# --------------------------- CoreModel forward --------------------------------

def core_model_forward(images, params, *, patch_size, num_proj):
    """Equivalent of CoreModel.forward with obj_queries=None.

    Returns (f_backbone [B,H',W',C], f_global [B,C], p_global [B,S,C]).
    `patch_size` / `num_proj` are static (use static_argnames with jit).
    """
    B, Cin, H, W = images.shape
    P = patch_size
    S = num_proj
    Hp, Wp = H // P, W // P
    N = Hp * Wp
    Din = Cin * P * P
    C = params["w_patch"].shape[1]
    SC = S * C

    LANE = 128
    Cp = _round_up(C, LANE)
    SCp = _round_up(SC, LANE)

    M = B * N
    # 256-row MXU tiles for big problems; a single full tile for small ones.
    # TODO(synk): prefer tile_m=128 on v5e; add a K (Din) grid axis +
    # vmem_limit_bytes when Din is large enough that double-buffered
    # (tile_m, Din) + (Din, Cp) blocks exceed the scoped-VMEM budget (v7x: 64 MiB).
    tile_m = 256 if M >= 256 else _round_up(M, 8)
    Mp = _round_up(M, tile_m)

    # ---- backbone patchification (layout glue: NCHW -> (B*N, Cin*P*P)) ----
    # TODO(synk): for large images accept NHWC input or gather patch rows
    # in-kernel to avoid this materialized transpose.
    x = images.reshape(B, Cin, Hp, P, Wp, P)
    x = jnp.transpose(x, (0, 2, 4, 1, 3, 5))             # [B, Hp, Wp, Cin, P, P]
    patches = x.reshape(M, Din)
    patches = jnp.pad(patches, ((0, Mp - M), (0, 0)))

    # ---- per-image mean-pool matrix (B, Mp): 1/N at image b's token rows ----
    rows = jnp.arange(Mp)
    row_img = rows // N
    pool = jnp.where(
        (row_img[None, :] == jnp.arange(B)[:, None]) & (rows[None, :] < M),
        jnp.float32(1.0 / N), jnp.float32(0.0))

    # ---- pad parameters to lane-dense (multiple-of-128) feature dims ----
    def pad2(a, r, c):
        return jnp.pad(a, ((0, r - a.shape[0]), (0, c - a.shape[1])))

    wpt = pad2(params["w_patch"], Din, Cp)
    bpt = pad2(params["b_patch"].reshape(1, C), 1, Cp)
    wg = pad2(params["w_g"], Cp, Cp)
    bg = pad2(params["b_g"].reshape(1, C), 1, Cp)
    wpj = pad2(params["w_p"], Cp, SCp)
    bpj = pad2(params["b_p"].reshape(1, SC), 1, SCp)

    f_slab, fg_pad, pg_pad = _fused_forward(
        patches, pool, wpt, bpt, wg, bg, wpj, bpj, tile_m=tile_m)

    f_backbone = f_slab[:M, :C].reshape(B, Hp, Wp, C)     # [B H W C]
    f_global = fg_pad[:, :C]                              # [B, C]
    p_global = pg_pad[:, :SC].reshape(B, S, C)            # [B, S, C]
    return f_backbone, f_global, p_global

# TODO(synk): obj_queries / obj_fn / obj_proj branch (slot-attention path) not
# instantiated here; CoreModel is exercised in its obj_queries=None mode.
# TODO(synk): bf16 activations/weights (fp32 accumulation) are a further win on
# v6e/v7x; kept fp32 end-to-end here so the reference check stays tight.


# ------------------------------- main -----------------------------------------

if __name__ == "__main__":
    B, Cin, H, W = 2, 3, 16, 16
    P = 8                      # patch size -> H' = W' = 2, N = 4 tokens
    C = 32                     # feature dim (padded to 128 lanes inside)
    S = 4                      # projection heads -> p_global [B, S, C]
    Din = Cin * P * P

    key = jax.random.PRNGKey(0)
    k_img, k_wp, k_bp, k_wg, k_bg, k_wq, k_bq = jax.random.split(key, 7)

    images = jax.random.normal(k_img, (B, Cin, H, W), jnp.float32)

    params = {
        "w_patch": 0.02 * jax.random.normal(k_wp, (Din, C), jnp.float32),
        "b_patch": 0.01 * jax.random.normal(k_bp, (1, C), jnp.float32),
        "w_g": 0.05 * jax.random.normal(k_wg, (C, C), jnp.float32),
        "b_g": 0.01 * jax.random.normal(k_bg, (1, C), jnp.float32),
        "w_p": 0.05 * jax.random.normal(k_wq, (C, S * C), jnp.float32),
        "b_p": 0.01 * jax.random.normal(k_bq, (1, S * C), jnp.float32),
    }

    fwd = jax.jit(core_model_forward, static_argnames=("patch_size", "num_proj"))
    f_backbone, f_global, p_global = fwd(images, params, patch_size=P, num_proj=S)
    jax.block_until_ready((f_backbone, f_global, p_global))

    # pure-JAX reference check
    x = images.reshape(B, Cin, H // P, P, W // P, P)
    x = jnp.transpose(x, (0, 2, 4, 1, 3, 5)).reshape(B, (H // P) * (W // P), Din)
    f_flat_ref = x @ params["w_patch"] + params["b_patch"]
    f_bb_ref = f_flat_ref.reshape(B, H // P, W // P, C)
    f_g_ref = jnp.mean(f_flat_ref, axis=1) @ params["w_g"] + params["b_g"]
    p_g_ref = (f_g_ref @ params["w_p"] + params["b_p"]).reshape(B, S, C)

    assert f_backbone.shape == (B, H // P, W // P, C)
    assert f_global.shape == (B, C)
    assert p_global.shape == (B, S, C)
    assert jnp.allclose(f_backbone, f_bb_ref, atol=2e-3, rtol=2e-3)
    assert jnp.allclose(f_global, f_g_ref, atol=2e-3, rtol=2e-3)
    assert jnp.allclose(p_global, p_g_ref, atol=2e-3, rtol=2e-3)

    print("KERNEL_OK")
</pallas_src>

<mosaic_0001>
module attributes {stable_mosaic.version = 11 : i64} {
  func.func @_core_kernel(%arg0: i32, %arg1: memref<8x192xf32, #tpu.memory_space<vmem>>, %arg2: memref<2x8xf32, #tpu.memory_space<vmem>>, %arg3: memref<192x128xf32, #tpu.memory_space<vmem>>, %arg4: memref<1x128xf32, #tpu.memory_space<vmem>>, %arg5: memref<128x128xf32, #tpu.memory_space<vmem>>, %arg6: memref<1x128xf32, #tpu.memory_space<vmem>>, %arg7: memref<128x128xf32, #tpu.memory_space<vmem>>, %arg8: memref<1x128xf32, #tpu.memory_space<vmem>>, %arg9: memref<8x128xf32, #tpu.memory_space<vmem>>, %arg10: memref<2x128xf32, #tpu.memory_space<vmem>>, %arg11: memref<2x128xf32, #tpu.memory_space<vmem>>, %arg12: memref<2x128xf32, #tpu.memory_space<vmem>>) attributes {dimension_semantics = [#tpu.dimension_semantics<arbitrary>], iteration_bounds = array<i64: 1>, scalar_prefetch = 0 : i64, scratch_operands = 1 : i64, tpu.core_type = #tpu.core_type<tc>, window_params = [{transform_indices = @transform_0, window_bounds = array<i64: 8, 192>}, {transform_indices = @transform_1, window_bounds = array<i64: 2, 8>}, {pipeline_mode = #tpu.pipeline_mode<synchronous>, transform_indices = @transform_2, window_bounds = array<i64: 192, 128>}, {pipeline_mode = #tpu.pipeline_mode<synchronous>, transform_indices = @transform_3, window_bounds = array<i64: 1, 128>}, {pipeline_mode = #tpu.pipeline_mode<synchronous>, transform_indices = @transform_4, window_bounds = array<i64: 128, 128>}, {pipeline_mode = #tpu.pipeline_mode<synchronous>, transform_indices = @transform_5, window_bounds = array<i64: 1, 128>}, {pipeline_mode = #tpu.pipeline_mode<synchronous>, transform_indices = @transform_6, window_bounds = array<i64: 128, 128>}, {pipeline_mode = #tpu.pipeline_mode<synchronous>, transform_indices = @transform_7, window_bounds = array<i64: 1, 128>}, {transform_indices = @transform_8, window_bounds = array<i64: 8, 128>}, {pipeline_mode = #tpu.pipeline_mode<synchronous>, transform_indices = @transform_9, window_bounds = array<i64: 2, 128>}, {pipeline_mode = #tpu.pipeline_mode<synchronous>, transform_indices = @transform_10, window_bounds = array<i64: 2, 128>}]} {
    %c0_i32 = arith.constant 0 : i32
    %0 = arith.cmpi eq, %arg0, %c0_i32 : i32
    %1 = arith.extui %0 : i1 to i32
    %c0_i32_0 = arith.constant 0 : i32
    %2 = arith.cmpi ne, %1, %c0_i32_0 : i32
    scf.if %2 {
      %cst_17 = arith.constant 0.000000e+00 : f32
      %18 = vector.broadcast %cst_17 : f32 to vector<2x128xf32>
      %c0_18 = arith.constant 0 : index
      %c0_19 = arith.constant 0 : index
      %19 = vector.load %arg12[%c0_18, %c0_19] : memref<2x128xf32, #tpu.memory_space<vmem>>, vector<2x128xf32>
      tpu.vector_store %arg12[%c0_18, %c0_19], %18 {strides = array<i32>} : memref<2x128xf32, #tpu.memory_space<vmem>>, vector<2x128xf32>,
    } else {
    }
    %c0 = arith.constant 0 : index
    %c0_1 = arith.constant 0 : index
    %3 = vector.load %arg1[%c0, %c0_1] : memref<8x192xf32, #tpu.memory_space<vmem>>, vector<8x192xf32>
    %c0_2 = arith.constant 0 : index
    %c0_3 = arith.constant 0 : index
    %4 = vector.load %arg3[%c0_2, %c0_3] : memref<192x128xf32, #tpu.memory_space<vmem>>, vector<192x128xf32>
    %cst = arith.constant dense<0.000000e+00> : vector<8x128xf32>
    %5 = tpu.matmul %3, %4, %cst {dimension_numbers = #tpu.dot_dimension_numbers<[1], [0], [0], [1], [0, 0, 1, 1], [], []>} : vector<8x192xf32>, vector<192x128xf32>, vector<8x128xf32> -> vector<8x128xf32>
    %c0_4 = arith.constant 0 : index
    %c0_5 = arith.constant 0 : index
    %6 = vector.load %arg4[%c0_4, %c0_5] : memref<1x128xf32, #tpu.memory_space<vmem>>, vector<1x128xf32>
    %7 = vector.broadcast %6 : vector<1x128xf32> to vector<8x128xf32>
    %8 = arith.addf %5, %7 : vector<8x128xf32>
    %c0_6 = arith.constant 0 : index
    %c0_7 = arith.constant 0 : index
    %9 = vector.load %arg9[%c0_6, %c0_7] : memref<8x128xf32, #tpu.memory_space<vmem>>, vector<8x128xf32>
    tpu.vector_store %arg9[%c0_6, %c0_7], %8 {strides = array<i32>} : memref<8x128xf32, #tpu.memory_space<vmem>>, vector<8x128xf32>,
    %c0_8 = arith.constant 0 : index
    %c0_9 = arith.constant 0 : index
    %10 = vector.load %arg12[%c0_8, %c0_9] : memref<2x128xf32, #tpu.memory_space<vmem>>, vector<2x128xf32>
    %c0_10 = arith.constant 0 : index
    %c0_11 = arith.constant 0 : index
    %11 = vector.load %arg2[%c0_10, %c0_11] : memref<2x8xf32, #tpu.memory_space<vmem>>, vector<2x8xf32>
    %cst_12 = arith.constant dense<0.000000e+00> : vector<2x128xf32>
    %12 = tpu.matmul %11, %8, %cst_12 {dimension_numbers = #tpu.dot_dimension_numbers<[1], [0], [0], [1], [0, 0, 1, 1], [], []>} : vector<2x8xf32>, vector<8x128xf32>, vector<2x128xf32> -> vector<2x128xf32>
    %13 = arith.addf %10, %12 : vector<2x128xf32>
    %c0_13 = arith.constant 0 : index
    %c0_14 = arith.constant 0 : index
    %14 = vector.load %arg12[%c0_13, %c0_14] : memref<2x128xf32, #tpu.memory_space<vmem>>, vector<2x128xf32>
    tpu.vector_store %arg12[%c0_13, %c0_14], %13 {strides = array<i32>} : memref<2x128xf32, #tpu.memory_space<vmem>>, vector<2x128xf32>,
    %c0_i32_15 = arith.constant 0 : i32
    %15 = arith.cmpi eq, %arg0, %c0_i32_15 : i32
    %16 = arith.extui %15 : i1 to i32
    %c0_i32_16 = arith.constant 0 : i32
    %17 = arith.cmpi ne, %16, %c0_i32_16 : i32
    scf.if %17 {
      %c0_17 = arith.constant 0 : index
      %c0_18 = arith.constant 0 : index
      %18 = vector.load %arg12[%c0_17, %c0_18] : memref<2x128xf32, #tpu.memory_space<vmem>>, vector<2x128xf32>
      %c0_19 = arith.constant 0 : index
      %c0_20 = arith.constant 0 : index
      %19 = vector.load %arg5[%c0_19, %c0_20] : memref<128x128xf32, #tpu.memory_space<vmem>>, vector<128x128xf32>
      %cst_21 = arith.constant dense<0.000000e+00> : vector<2x128xf32>
      %20 = tpu.matmul %18, %19, %cst_21 {dimension_numbers = #tpu.dot_dimension_numbers<[1], [0], [0], [1], [0, 0, 1, 1], [], []>} : vector<2x128xf32>, vector<128x128xf32>, vector<2x128xf32> -> vector<2x128xf32>
      %c0_22 = arith.constant 0 : index
      %c0_23 = arith.constant 0 : index
      %21 = vector.load %arg6[%c0_22, %c0_23] : memref<1x128xf32, #tpu.memory_space<vmem>>, vector<1x128xf32>
      %22 = vector.broadcast %21 : vector<1x128xf32> to vector<2x128xf32>
      %23 = arith.addf %20, %22 : vector<2x128xf32>
      %c0_24 = arith.constant 0 : index
      %c0_25 = arith.constant 0 : index
      %24 = vector.load %arg7[%c0_24, %c0_25] : memref<128x128xf32, #tpu.memory_space<vmem>>, vector<128x128xf32>
      %cst_26 = arith.constant dense<0.000000e+00> : vector<2x128xf32>
      %25 = tpu.matmul %23, %24, %cst_26 {dimension_numbers = #tpu.dot_dimension_numbers<[1], [0], [0], [1], [0, 0, 1, 1], [], []>} : vector<2x128xf32>, vector<128x128xf32>, vector<2x128xf32> -> vector<2x128xf32>
      %c0_27 = arith.constant 0 : index
      %c0_28 = arith.constant 0 : index
      %26 = vector.load %arg8[%c0_27, %c0_28] : memref<1x128xf32, #tpu.memory_space<vmem>>, vector<1x128xf32>
      %27 = vector.broadcast %26 : vector<1x128xf32> to vector<2x128xf32>
      %28 = arith.addf %25, %27 : vector<2x128xf32>
      %c0_29 = arith.constant 0 : index
      %c0_30 = arith.constant 0 : index
      %29 = vector.load %arg10[%c0_29, %c0_30] : memref<2x128xf32, #tpu.memory_space<vmem>>, vector<2x128xf32>
      tpu.vector_store %arg10[%c0_29, %c0_30], %23 {strides = array<i32>} : memref<2x128xf32, #tpu.memory_space<vmem>>, vector<2x128xf32>,
      %c0_31 = arith.constant 0 : index
      %c0_32 = arith.constant 0 : index
      %30 = vector.load %arg11[%c0_31, %c0_32] : memref<2x128xf32, #tpu.memory_space<vmem>>, vector<2x128xf32>
      tpu.vector_store %arg11[%c0_31, %c0_32], %28 {strides = array<i32>} : memref<2x128xf32, #tpu.memory_space<vmem>>, vector<2x128xf32>,
    } else {
    }
    return
  }
  func.func @transform_0(%arg0: i32) -> (i32, i32) {
    %c0_i32 = arith.constant 0 : i32
    %c0_i32_0 = arith.constant 0 : i32
    return %arg0, %c0_i32 : i32, i32
  }
  func.func @transform_1(%arg0: i32) -> (i32, i32) {
    %c0_i32 = arith.constant 0 : i32
    %c0_i32_0 = arith.constant 0 : i32
    return %c0_i32, %arg0 : i32, i32
  }
  func.func @transform_2(%arg0: i32) -> (i32, i32) {
    %c0_i32 = arith.constant 0 : i32
    %c0_i32_0 = arith.constant 0 : i32
    %c0_i32_1 = arith.constant 0 : i32
    return %c0_i32, %c0_i32_0 : i32, i32
  }
  func.func @transform_3(%arg0: i32) -> (i32, i32) {
    %c0_i32 = arith.constant 0 : i32
    %c0_i32_0 = arith.constant 0 : i32
    %c0_i32_1 = arith.constant 0 : i32
    return %c0_i32, %c0_i32_0 : i32, i32
  }
  func.func @transform_4(%arg0: i32) -> (i32, i32) {
    %c0_i32 = arith.constant 0 : i32
    %c0_i32_0 = arith.constant 0 : i32
    %c0_i32_1 = arith.constant 0 : i32
    return %c0_i32, %c0_i32_0 : i32, i32
  }
  func.func @transform_5(%arg0: i32) -> (i32, i32) {
    %c0_i32 = arith.constant 0 : i32
    %c0_i32_0 = arith.constant 0 : i32
    %c0_i32_1 = arith.constant 0 : i32
    return %c0_i32, %c0_i32_0 : i32, i32
  }
  func.func @transform_6(%arg0: i32) -> (i32, i32) {
    %c0_i32 = arith.constant 0 : i32
    %c0_i32_0 = arith.constant 0 : i32
    %c0_i32_1 = arith.constant 0 : i32
    return %c0_i32, %c0_i32_0 : i32, i32
  }
  func.func @transform_7(%arg0: i32) -> (i32, i32) {
    %c0_i32 = arith.constant 0 : i32
    %c0_i32_0 = arith.constant 0 : i32
    %c0_i32_1 = arith.constant 0 : i32
    return %c0_i32, %c0_i32_0 : i32, i32
  }
  func.func @transform_8(%arg0: i32) -> (i32, i32) {
    %c0_i32 = arith.constant 0 : i32
    %c0_i32_0 = arith.constant 0 : i32
    return %arg0, %c0_i32 : i32, i32
  }
  func.func @transform_9(%arg0: i32) -> (i32, i32) {
    %c0_i32 = arith.constant 0 : i32
    %c0_i32_0 = arith.constant 0 : i32
    %c0_i32_1 = arith.constant 0 : i32
    return %c0_i32, %c0_i32_0 : i32, i32
  }
  func.func @transform_10(%arg0: i32) -> (i32, i32) {
    %c0_i32 = arith.constant 0 : i32
    %c0_i32_0 = arith.constant 0 : i32
    %c0_i32_1 = arith.constant 0 : i32
    return %c0_i32, %c0_i32_0 : i32, i32
  }
}

</mosaic_0001>

<bundles_post_ra>
// kernel: core_model_forward.1
= control target key start
LH: loop header
LB: loop body
LE: loop exit
PB: predicated region body
PF: predicated region fallthrough
CT: control target
= control target key end

     0   :  { %16 = vsyncpa [#allocation4], 0  ;;  %v702_v3 = vmov 0.0|0.0   ;;  %vm72_vm0 = vcmask 523264   ;;  %s1011_s0 = inlined_call_operand.vmem [shape: f32[8,192], index: 0, kind: input, shape index: {}]   ;;  %s1012_s1 = inlined_call_operand.vmem [shape: f32[2,8], index: 1, kind: input, shape index: {}]   ;;  %s1013_s2 = inlined_call_operand.vmem [shape: f32[192,128], index: 2, kind: input, shape index: {}]   ;;  %s1014_s3 = inlined_call_operand.vmem [shape: f32[1,128], index: 3, kind: input, shape index: {}]   ;;  %s1015_s4 = inlined_call_operand.vmem [shape: f32[128,128], index: 4, kind: input, shape index: {}]   ;;  %s1016_s5 = inlined_call_operand.vmem [shape: f32[1,128], index: 5, kind: input, shape index: {}]   ;;  %s1017_s6 = inlined_call_operand.vmem [shape: f32[128,128], index: 6, kind: input, shape index: {}]   ;;  %s1018_s7 = inlined_call_operand.vmem [shape: f32[1,128], index: 7, kind: input, shape index: {}]   ;;  %s1019_s8 = inlined_call_operand.hbm [shape: f32[8,128], index: 8, kind: output, shape index: {0}]   ;;  %s1020_s9 = inlined_call_operand.hbm [shape: f32[2,128], index: 9, kind: output, shape index: {1}]   ;;  %s1021_s10 = inlined_call_operand.vmem [shape: f32[2,128], index: 10, kind: output, shape index: {2}]  }
   0x1   :  { %v41_v0 = vld [vmem:[%s1013_s2] sm:$0xff]  ;;  %v42_v1 = vld [vmem:[%s1013_s2 + $0x8] sm:$0xff]  ;;  %v43_v2 = vld [vmem:[%s1013_s2 + $0x10] sm:$0xff]  ;;  %565 = vmatprep.subr.bf16.mxu0 %v702_v3  ;;  %601 = vmatprep.subr.bf16.mxu1 %v702_v3 }
   0x2   :  { %v566_v4 = vpack.c.bf16 %v42_v1, %v41_v0  ;;  %v44_v5 = vld [vmem:[%s1013_s2 + $0x18] sm:$0xff]  ;;  %v45_v7 = vld [vmem:[%s1013_s2 + $0x20] sm:$0xff]  ;;  %v46_v8 = vld [vmem:[%s1013_s2 + $0x28] sm:$0xff] }
   0x3   :  { %v569_v6 = vpack.c.bf16 %v44_v5, %v43_v2  ;;  %v572_v9 = vpack.c.bf16 %v46_v8, %v45_v7  ;;  %v47_v10 = vld [vmem:[%s1013_s2 + $0x30] sm:$0xff]  ;;  %v48_v11 = vld [vmem:[%s1013_s2 + $0x38] sm:$0xff]  ;;  %v40_v12 = vld [vmem:[%s1011_s0 + $0x8] sm:$0xff] }
   0x4   :  { %567 = vmatpush1.bf16.msra.mxu0 %v566_v4  ;;  %450 = vmatprep.mubr.msk.f32.mxu0 %vm72_vm0, %v40_v12 }
   0x5   :  { %568 = vmatprep.subr.bf16.mxu0 %v702_v3 }
   0x8   :  { %570 = vmatpush1.bf16.msra.mxu0 %v569_v6 }
   0x9   :  { %571 = vmatprep.subr.bf16.mxu0 %v702_v3 }
   0xa   :  { %17 = vsyncpa [#allocation6], 0  ;;  %v575_v13 = vpack.c.bf16 %v48_v11, %v47_v10  ;;  %v49_v14 = vld [vmem:[%s1013_s2 + $0x40] sm:$0xff]  ;;  %v50_v15 = vld [vmem:[%s1013_s2 + $0x48] sm:$0xff]  ;;  %v703_v39 = vmov 0.0   ;;  %vm704_vm1 = vmmov 0  }
   0xb   :  { %v578_v16 = vpack.c.bf16 %v50_v15, %v49_v14  ;;  %v51_v17 = vld [vmem:[%s1013_s2 + $0x50] sm:$0xff]  ;;  %v52_v18 = vld [vmem:[%s1013_s2 + $0x58] sm:$0xff]  ;;  %v53_v20 = vld [vmem:[%s1013_s2 + $0x60] sm:$0xff]  ;;  %38 = vst [vmem:[#allocation2] sm:$0x3] %v703_v39  ;;  %527 = vmatprep.mubr.msk.f32.mxu1 %vm704_vm1, %v703_v39  ;;  %vm149_vm2 = vcmask 64512  }
   0xc   :  { %573 = vmatpush1.bf16.msra.mxu0 %v572_v9  ;;  %v581_v19 = vpack.c.bf16 %v52_v18, %v51_v17  ;;  %v54_v21 = vld [vmem:[%s1013_s2 + $0x68] sm:$0xff]  ;;  %v55_v23 = vld [vmem:[%s1013_s2 + $0x70] sm:$0xff]  ;;  %v56_v24 = vld [vmem:[%s1013_s2 + $0x78] sm:$0xff]  ;;  %s705_s23 = smov [#allocation3]  }
   0xd   :  { %574 = vmatprep.subr.bf16.mxu0 %v702_v3  ;;  %v584_v22 = vpack.c.bf16 %v54_v21, %v53_v20  ;;  %v587_v25 = vpack.c.bf16 %v56_v24, %v55_v23  ;;  %v57_v26 = vld [vmem:[%s1013_s2 + $0x80] sm:$0xff]  ;;  %v58_v27 = vld [vmem:[%s1013_s2 + $0x88] sm:$0xff]  ;;  %v59_v29 = vld [vmem:[%s1013_s2 + $0x90] sm:$0xff]  ;;  %s423_s24 = sshll.u32 %s705_s23, 4  ;;  %s424_s24 = int_to_ptr.vmem [resolvable:$true] %s423_s24 }
   0xe   :  { %v590_v28 = vpack.c.bf16 %v58_v27, %v57_v26  ;;  %v60_v30 = vld [vmem:[%s1013_s2 + $0x98] sm:$0xff]  ;;  %v61_v32 = vld [vmem:[%s1013_s2 + $0xa0] sm:$0xff]  ;;  %v62_v33 = vld [vmem:[%s1013_s2 + $0xa8] sm:$0xff]  ;;  %s654_s26 = scalar_lea.vmem %s424_s24, 128  ;;  %p659_p1 = scmp.lt.s32.totalorder %s424_s24, %s424_s24 }
   0xf   :  { %v593_v31 = vpack.c.bf16 %v60_v30, %v59_v29  ;;  %v596_v34 = vpack.c.bf16 %v62_v33, %v61_v32  ;;  %v63_v35 = vld [vmem:[%s1013_s2 + $0xb0] sm:$0xff]  ;;  %v64_v36 = vld [vmem:[%s1013_s2 + $0xb8] sm:$0xff]  ;;  %v39_v38 = vld [vmem:[%s1011_s0] sm:$0xff]  ;;  %s706_s2 = smov [#allocation5]   ;;  %p655_p0 = scmp.ne.s32.totalorder %s424_s24, %s654_s26 }
  0x10   :  { %576 = vmatpush1.bf16.msra.mxu0 %v575_v13  ;;  %v599_v37 = vpack.c.bf16 %v64_v36, %v63_v35  ;;  %v229_v40 = vld [vmem:[%s1015_s4] sm:$0xff]  ;;  %v230_v41 = vld [vmem:[%s1015_s4 + $0x8] sm:$0xff]  ;;  %v231_v42 = vld [vmem:[%s1015_s4 + $0x10] sm:$0xff]  ;;  %s433_s25 = sshll.u32 %s706_s2, 4  ;;  %p660_p2 = scmp.lt.s32.totalorder %s654_s26, %s654_s26  ;;  %s434_s25 = int_to_ptr.vmem [resolvable:$true] %s433_s25 }
  0x11   :  { %577 = vmatprep.subr.bf16.mxu0 %v702_v3  ;;  %v602_v43 = vpack.c.bf16 %v230_v41, %v229_v40  ;;  %v232_v44 = vld [vmem:[%s1015_s4 + $0x18] sm:$0xff]  ;;  %v233_v46 = vld [vmem:[%s1015_s4 + $0x20] sm:$0xff]  ;;  %v234_v47 = vld [vmem:[%s1015_s4 + $0x28] sm:$0xff] }
  0x12   :  { %v605_v45 = vpack.c.bf16 %v232_v44, %v231_v42  ;;  %v608_v48 = vpack.c.bf16 %v234_v47, %v233_v46  ;;  %v235_v49 = vld [vmem:[%s1015_s4 + $0x30] sm:$0xff]  ;;  %v236_v50 = vld [vmem:[%s1015_s4 + $0x38] sm:$0xff]  ;;  %v237_v52 = vld [vmem:[%s1015_s4 + $0x40] sm:$0xff]  ;;  %p661_p3 = por %p660_p2, %p659_p1 }
  0x13   :  { %603 = vmatpush3.bf16.msra.mxu1 %v602_v43  ;;  %v611_v51 = vpack.c.bf16 %v236_v50, %v235_v49  ;;  %v238_v53 = vld [vmem:[%s1015_s4 + $0x48] sm:$0xff]  ;;  %v449_v55 = vld [vmem:[%s1014_s3] ss:$0 sm:$0xff]  ;;  %v239_v60 = vld [vmem:[%s1015_s4 + $0x50] sm:$0xff] }
  0x14   :  { %579 = vmatpush1.bf16.msra.mxu0 %v578_v16  ;;  %604 = vmatprep.subr.bf16.mxu1 %v702_v3  ;;  %v614_v54 = vpack.c.bf16 %v238_v53, %v237_v52  ;;  %v148_v59 = vld [vmem:[%s1012_s1] sm:$0x3]  ;;  %v240_v61 = vld [vmem:[%s1015_s4 + $0x58] sm:$0xff]  ;;  %v242_v0 = vld [vmem:[%s1015_s4 + $0x68] sm:$0xff]  ;;  %p662_p4 = pnand %p661_p3, %p655_p0 }
  0x15   :  { %580 = vmatprep.subr.bf16.mxu0 %v702_v3  ;;  %v617_v62 = vpack.c.bf16 %v240_v61, %v239_v60  ;;  %v241_v63 = vld [vmem:[%s1015_s4 + $0x60] sm:$0xff]  ;;  %v243_v2 = vld [vmem:[%s1015_s4 + $0x70] sm:$0xff]  ;;  %v244_v4 = vld [vmem:[%s1015_s4 + $0x78] sm:$0xff] }
  0x16   :  { %v620_v1 = vpack.c.bf16 %v242_v0, %v241_v63  ;;  %v623_v5 = vpack.c.bf16 %v244_v4, %v243_v2  ;;  %v147_v6 = vld [vmem:[#allocation2] sm:$0x3]  ;;  %v323_v11 = vld [vmem:[%s1017_s6 + $0x8] sm:$0xff]  ;;  %v324_v13 = vld [vmem:[%s1017_s6 + $0x10] sm:$0xff] }
  0x17   :  { %606 = vmatpush3.bf16.msra.mxu1 %v605_v45  ;;  %v322_v10 = vld [vmem:[%s1017_s6] sm:$0xff]  ;;  %v325_v14 = vld [vmem:[%s1017_s6 + $0x18] sm:$0xff]  ;;  %v327_v18 = vld [vmem:[%s1017_s6 + $0x28] sm:$0xff] }
  0x18   :  { %582 = vmatpush1.bf16.msra.mxu0 %v581_v19  ;;  %607 = vmatprep.subr.bf16.mxu1 %v702_v3  ;;  %v626_v12 = vpack.c.bf16 %v323_v11, %v322_v10  ;;  %v629_v16 = vpack.c.bf16 %v325_v14, %v324_v13  ;;  %v326_v17 = vld [vmem:[%s1017_s6 + $0x20] sm:$0xff]  ;;  %v328_v20 = vld [vmem:[%s1017_s6 + $0x30] sm:$0xff]  ;;  %v329_v21 = vld [vmem:[%s1017_s6 + $0x38] sm:$0xff] }
  0x19   :  { %583 = vmatprep.subr.bf16.mxu0 %v702_v3  ;;  %v632_v19 = vpack.c.bf16 %v327_v18, %v326_v17  ;;  %v330_v23 = vld [vmem:[%s1017_s6 + $0x40] sm:$0xff]  ;;  %v331_v24 = vld [vmem:[%s1017_s6 + $0x48] sm:$0xff]  ;;  %v332_v26 = vld [vmem:[%s1017_s6 + $0x50] sm:$0xff] }
  0x1a   :  { %v333_v27 = vld [vmem:[%s1017_s6 + $0x58] sm:$0xff]  ;;  %v334_v29 = vld [vmem:[%s1017_s6 + $0x60] sm:$0xff]  ;;  %v335_v30 = vld [vmem:[%s1017_s6 + $0x68] sm:$0xff] }
  0x1b   :  { %609 = vmatpush3.bf16.msra.mxu1 %v608_v48  ;;  %v336_v32 = vld [vmem:[%s1017_s6 + $0x70] sm:$0xff]  ;;  %v337_v33 = vld [vmem:[%s1017_s6 + $0x78] sm:$0xff]  ;;  %v452_v35 = vld [vmem:[%s1016_s5] ss:$0 sm:$0xff] }
  0x1c   :  { %585 = vmatpush1.bf16.msra.mxu0 %v584_v22  ;;  %610 = vmatprep.subr.bf16.mxu1 %v702_v3  ;;  %v635_v22 = vpack.c.bf16 %v329_v21, %v328_v20 }
  0x1d   :  { %586 = vmatprep.subr.bf16.mxu0 %v702_v3 }
  0x1f   :  { %612 = vmatpush3.bf16.msra.mxu1 %v611_v51 }
  0x20   :  { %588 = vmatpush1.bf16.msra.mxu0 %v587_v25  ;;  %613 = vmatprep.subr.bf16.mxu1 %v702_v3  ;;  %v638_v25 = vpack.c.bf16 %v331_v24, %v330_v23 }
  0x21   :  { %589 = vmatprep.subr.bf16.mxu0 %v702_v3 }
  0x23   :  { %615 = vmatpush3.bf16.msra.mxu1 %v614_v54 }
  0x24   :  { %591 = vmatpush1.bf16.msra.mxu0 %v590_v28  ;;  %616 = vmatprep.subr.bf16.mxu1 %v702_v3  ;;  %v641_v28 = vpack.c.bf16 %v333_v27, %v332_v26 }
  0x25   :  { %592 = vmatprep.subr.bf16.mxu0 %v702_v3 }
  0x27   :  { %618 = vmatpush3.bf16.msra.mxu1 %v617_v62 }
  0x28   :  { %594 = vmatpush1.bf16.msra.mxu0 %v593_v31  ;;  %619 = vmatprep.subr.bf16.mxu1 %v702_v3  ;;  %v644_v31 = vpack.c.bf16 %v335_v30, %v334_v29 }
  0x29   :  { %595 = vmatprep.subr.bf16.mxu0 %v702_v3 }
  0x2b   :  { %621 = vmatpush3.bf16.msra.mxu1 %v620_v1 }
  0x2c   :  { %597 = vmatpush1.bf16.msra.mxu0 %v596_v34  ;;  %622 = vmatprep.subr.bf16.mxu1 %v702_v3  ;;  %v647_v34 = vpack.c.bf16 %v337_v33, %v336_v32 }
  0x2d   :  { %598 = vmatprep.subr.bf16.mxu0 %v702_v3 }
  0x2f   :  { %624 = vmatpush3.bf16.msra.mxu1 %v623_v5 }
  0x30   :  { %600 = vmatpush1.bf16.msra.mxu0 %v599_v37  ;;  %625 = vmatprep.subr.bf16.mxu1 %v702_v3 }
  0x31   :  { %490 = vmatprep.subr.mxu0 %v703_v39 }
  0x33   :  { %141 = vmatmul.mubr.f32.vlgmr.msra.gmra.mrb[0].mxu0 %v39_v38 }
  0x34   :  { %492 = vmatprep.mubr.msk.f32.mxu0 %vm704_vm1, %v703_v39 }
 0x106   :  { %v142_v56 = vpop.f32.mrb[0].mxu0 }
 0x107   :  { %v143_v57 = vadd.f32 %v449_v55, %v142_v56  ;;  %v144_v58 = vpop.f32.mrb[1].mxu0 }
 0x109   :  { %146 = vst [vmem:[#allocation3] sm:$0xff] %v143_v57  ;;  %491 = vmatpush3.msra.mxu0 %v143_v57 }
 0x10a   :  { %493 = vmatmul.mubr.msk.f32.vlgmr.msra.gmra.mrb[2].mxu0 %vm149_vm2, %v148_v59 }
 0x1dd   :  { %v219_v7 = vpop.f32.mrb[2].mxu0 }
 0x1de   :  { %v223_v8 = vadd.f32 %v219_v7, %v147_v6  ;;  %v494_v9 = vpop.f32.mrb[3].mxu0 }
 0x1e0   :  { %224 = vst [vmem:[#allocation2] sm:$0x3] %v223_v8 }
 0x1e7   :  { %v228_v15 = vld [vmem:[#allocation2] sm:$0x3] }
 0x1e8   :  { %528 = vmatmul.mubr.f32.vlgmr.msra.gmra.mrb[0].mxu1 %v228_v15 }
 0x1e9   :  { %627 = vmatpush3.bf16.msra.mxu1 %v626_v12  ;;  %562 = vmatprep.mubr.msk.f32.mxu1 %vm704_vm1, %v703_v39 }
 0x1ea   :  { %628 = vmatprep.subr.bf16.mxu1 %v702_v3 }
 0x1ed   :  { %630 = vmatpush3.bf16.msra.mxu1 %v629_v16 }
 0x1ee   :  { %631 = vmatprep.subr.bf16.mxu1 %v702_v3 }
 0x1f1   :  { %633 = vmatpush3.bf16.msra.mxu1 %v632_v19 }
 0x1f2   :  { %634 = vmatprep.subr.bf16.mxu1 %v702_v3 }
 0x1f5   :  { %636 = vmatpush3.bf16.msra.mxu1 %v635_v22 }
 0x1f6   :  { %637 = vmatprep.subr.bf16.mxu1 %v702_v3 }
 0x1f9   :  { %639 = vmatpush3.bf16.msra.mxu1 %v638_v25 }
 0x1fa   :  { %640 = vmatprep.subr.bf16.mxu1 %v702_v3 }
 0x1fd   :  { %642 = vmatpush3.bf16.msra.mxu1 %v641_v28 }
 0x1fe   :  { %643 = vmatprep.subr.bf16.mxu1 %v702_v3 }
 0x201   :  { %645 = vmatpush3.bf16.msra.mxu1 %v644_v31 }
 0x202   :  { %646 = vmatprep.subr.bf16.mxu1 %v702_v3 }
 0x205   :  { %648 = vmatpush3.bf16.msra.mxu1 %v647_v34 }
 0x2bb   :  { %v318_v36 = vpop.f32.mrb[0].mxu1 }
 0x2bc   :  { %v319_v37 = vadd.f32 %v452_v35, %v318_v36  ;;  %v529_v38 = vpop.f32.mrb[1].mxu1 }
 0x2be   :  { %415 = vst [vmem:[#allocation5] sm:$0x3] %v319_v37  ;;  %563 = vmatmul.mubr.f32.vlgmr.msra.gmra.mrb[2].mxu1 %v319_v37 }
 0x2bf   :  { %665 = shalt.err (!%p662_p4)
}
 0x2c0   :  { %s666_s27 = scalar_lea.hbm %s1019_s8, 128 }
 0x2c1   :  { %p667_p5 = scmp.ne.s32.totalorder %s1019_s8, %s666_s27  ;;  %p670_p6 = scmp.lt.u32.totalorder %s666_s27, %s1019_s8 }
 0x2c3   :  { %p672_p7 = pnand %p670_p6, %p667_p5 }
 0x2c5   :  { %675 = shalt.err (!%p672_p7)
}
 0x2c6   :  { %426 = dma.vmem_to_hbm [thread:$0]  %s424_s24, 128, %s1019_s8, [#allocation4]  }
 0x2c7   :  { %s676_s11 = scalar_lea.vmem %s434_s25, 32  ;;  %p681_p9 = scmp.lt.s32.totalorder %s434_s25, %s434_s25 }
 0x2c8   :  { %p677_p8 = scmp.ne.s32.totalorder %s434_s25, %s676_s11  ;;  %p682_p10 = scmp.lt.s32.totalorder %s676_s11, %s676_s11 }
 0x2ca   :  { %p683_p11 = por %p682_p10, %p681_p9 }
 0x2cc   :  { %p684_p12 = pnand %p683_p11, %p677_p8 }
 0x2ce   :  { %687 = shalt.err (!%p684_p12)
}
 0x2cf   :  { %s688_s14 = scalar_lea.hbm %s1020_s9, 32 }
 0x2d0   :  { %p689_p13 = scmp.ne.s32.totalorder %s1020_s9, %s688_s14  ;;  %p692_p0 = scmp.lt.u32.totalorder %s688_s14, %s1020_s9 }
 0x2d2   :  { %p694_p1 = pnand %p692_p0, %p689_p13 }
 0x2d4   :  { %697 = shalt.err (!%p694_p1)
}
 0x2d5   :  { %436 = dma.vmem_to_hbm [thread:$0]  %s434_s25, 32, %s1020_s9, [#allocation6]   ;;  %v453_v3 = vld [vmem:[%s1018_s7] ss:$0 sm:$0xff] }
 0x391   :  { %v411_v39 = vpop.f32.mrb[2].mxu1 }
 0x392   :  { %v412_v40 = vadd.f32 %v453_v3, %v411_v39  ;;  %v564_v41 = vpop.f32.mrb[3].mxu1 }
 0x394   :  { %416 = vst [vmem:[%s1021_s10] sm:$0x3] %v412_v40 }
 0x395   :  { %698 = dma.done.wait [#allocation4], 128  }
 0x396   :  { %699 = vsyncadd [#allocation4], 4294967168 }
 0x397   :  { %700 = dma.done.wait [#allocation6], 32  }
 0x398   :  { %701 = vsyncadd [#allocation6], 4294967264 }
 0x399   :  { %447 = vsyncpa [#allocation4], 1 }
 0x39a   :  { %448 = vsyncpa [#allocation6], 1 }

</bundles_post_ra>
